<compile_context>
chip_gen: v7x
topology: tpu7x:2x2x1
jax: 0.10.0
libtpu: 0.0.40
codegen_flags: <defaults>
</compile_context>

<pallas_src>
import jax
import jax.numpy as jnp
from jax.experimental import pallas as pl
from jax.experimental.pallas import tpu as pltpu

_SUBLANE = 8
_LANE = 128


def _round_up(n, m):
    return ((n + m - 1) // m) * m


# ----------------------------------------------------------------------------
# Fused kernel: DMA PE-row gather -> Linear -> SiLU -> Linear -> (1, B, D) out
# ----------------------------------------------------------------------------
def _timestep_embed_kernel(ts_ref,                    # (Bp,) int32, SMEM (prefetch)
                           pe_hbm,                    # (Lp, Dp) f32, HBM (ANY)
                           w1_ref, b1_ref, w2_ref, b2_ref,   # VMEM blocks
                           o_ref,                     # (1, Bp, Dp) output
                           x_buf,                     # (Bp, Dp) f32 VMEM scratch
                           sem):                      # (Bp,) DMA semaphores
    bp = x_buf.shape[0]

    # Gather: B single-row DMAs pe[ts[i]] -> x_buf[i].  Rows are bit-exact
    # (no MXU pass) and only B*Dp*4 bytes transit HBM->VMEM.
    copies = []
    for i in range(bp):                               # Bp is small; unrolled
        cp = pltpu.make_async_copy(
            pe_hbm.at[pl.ds(ts_ref[i], 1), :],
            x_buf.at[pl.ds(i, 1), :],
            sem.at[i])
        cp.start()
        copies.append(cp)
    for cp in copies:
        cp.wait()

    x = x_buf[...]                                    # (Bp, Dp) f32

    # time_embed MLP: bf16 operands on the MXU, f32 accumulate, f32 bias/SiLU.
    h = jnp.dot(x.astype(jnp.bfloat16), w1_ref[...],
                preferred_element_type=jnp.float32) + b1_ref[...]
    h = h * jax.nn.sigmoid(h)                         # SiLU in f32
    y = jnp.dot(h.astype(jnp.bfloat16), w2_ref[...],
                preferred_element_type=jnp.float32) + b2_ref[...]

    # Write directly in (1, B, D) layout == permute(1, 0, 2) of (B, 1, D).
    o_ref[0] = y.astype(o_ref.dtype)


def timestep_embed_pallas(ts_pad, pe_pad, w1, b1, w2, b2,
                          out_dtype=jnp.float32):
    """ts_pad: (B_pad,) int32; pe_pad: (L_pad, D_pad) f32; W bf16 (in, out)."""
    bp = ts_pad.shape[0]
    dp = pe_pad.shape[1]

    # Explicit VMEM budget: single-buffered bf16 weights + biases + gather
    # scratch + double-buffered output, with generous margin.
    w_bytes = 2 * dp * dp * 2                 # bf16, Buffered(1)
    misc_bytes = 2 * dp * 4 + bp * dp * 4 + 2 * bp * dp * 4
    needed = w_bytes + misc_bytes
    vmem_limit = int(min(max(2 * needed + (2 << 20), 16 << 20), 64 << 20))

    one = pl.Buffered(buffer_count=1)         # single-visit blocks: no 2x VMEM
    grid_spec = pltpu.PrefetchScalarGridSpec(
        num_scalar_prefetch=1,
        grid=(1,),
        in_specs=[
            pl.BlockSpec(memory_space=pl.ANY),                      # PE (HBM)
            pl.BlockSpec((dp, dp), lambda i, ts: (0, 0), pipeline_mode=one),
            pl.BlockSpec((1, dp), lambda i, ts: (0, 0), pipeline_mode=one),
            pl.BlockSpec((dp, dp), lambda i, ts: (0, 0), pipeline_mode=one),
            pl.BlockSpec((1, dp), lambda i, ts: (0, 0), pipeline_mode=one),
        ],
        out_specs=pl.BlockSpec((1, bp, dp), lambda i, ts: (0, 0, 0)),
        scratch_shapes=[
            pltpu.VMEM((bp, dp), jnp.float32),
            pltpu.SemaphoreType.DMA((bp,)),
        ],
    )
    return pl.pallas_call(
        _timestep_embed_kernel,
        out_shape=jax.ShapeDtypeStruct((1, bp, dp), out_dtype),
        grid_spec=grid_spec,
        compiler_params=pltpu.CompilerParams(
            dimension_semantics=("arbitrary",),
            vmem_limit_bytes=vmem_limit),
    )(ts_pad, pe_pad, w1, b1, w2, b2)


# ----------------------------------------------------------------------------
# Module-equivalent setup / wrapper
# ----------------------------------------------------------------------------
def make_positional_encoding(max_len, d_model):
    """Standard sinusoidal PE table, shape (max_len, 1, d_model) like the
    PyTorch PositionalEncoding buffer `pe` (assumes even d_model)."""
    pos = jnp.arange(max_len, dtype=jnp.float32)[:, None]          # (L, 1)
    div = jnp.exp(jnp.arange(0, d_model, 2, dtype=jnp.float32)
                  * (-jnp.log(10000.0) / d_model))                 # (D/2,)
    pe = jnp.zeros((max_len, d_model), dtype=jnp.float32)
    pe = pe.at[:, 0::2].set(jnp.sin(pos * div))
    pe = pe.at[:, 1::2].set(jnp.cos(pos * div))
    return pe[:, None, :]                                          # (L, 1, D)


def init_params(key, latent_dim):
    """nn.Linear(D, D) -> SiLU -> nn.Linear(D, D); weights stored as (in, out)
    so the kernel can do x @ W directly."""
    k1, k2, k3, k4 = jax.random.split(key, 4)
    bound = 1.0 / jnp.sqrt(latent_dim)
    w1 = jax.random.uniform(k1, (latent_dim, latent_dim), jnp.float32,
                            -bound, bound)
    b1 = jax.random.uniform(k2, (1, latent_dim), jnp.float32, -bound, bound)
    w2 = jax.random.uniform(k3, (latent_dim, latent_dim), jnp.float32,
                            -bound, bound)
    b2 = jax.random.uniform(k4, (1, latent_dim), jnp.float32, -bound, bound)
    return w1, b1, w2, b2


def prepare_embedder(pe, w1, b1, w2, b2):
    """Zero-pad PE / weights ONCE to lane-dense TPU shapes; weights -> bf16."""
    max_len, _, d = pe.shape
    lp = _round_up(max_len, _SUBLANE)    # PE stays in HBM; modest row pad only
    dp = _round_up(d, _LANE)             # lane-dense feature dim
    pe_pad = jnp.zeros((lp, dp), jnp.float32).at[:max_len, :d].set(pe[:, 0, :])
    w1p = jnp.zeros((dp, dp), jnp.bfloat16).at[:d, :d].set(
        w1.astype(jnp.bfloat16))
    b1p = jnp.zeros((1, dp), jnp.float32).at[:, :d].set(b1)
    w2p = jnp.zeros((dp, dp), jnp.bfloat16).at[:d, :d].set(
        w2.astype(jnp.bfloat16))
    b2p = jnp.zeros((1, dp), jnp.float32).at[:, :d].set(b2)
    return {"pe": pe_pad, "w1": w1p, "b1": b1p, "w2": w2p, "b2": b2p,
            "d": d, "max_len": max_len}


def timestep_embedder_forward(timesteps, emb, out_dtype=jnp.float32):
    """Equivalent of TimestepEmbedder.forward: int timesteps (B,) -> (1, B, D).
    Out-of-range timesteps are clamped (PyTorch would raise an index error)."""
    b = timesteps.shape[0]
    bp = _round_up(b, _SUBLANE)
    ts = jnp.clip(timesteps.astype(jnp.int32), 0, emb["max_len"] - 1)
    # Pad batch to a full sublane group; padded rows gather PE row 0 and are
    # sliced off below (harmless at Bp=8).
    ts_pad = jnp.zeros((bp,), jnp.int32).at[:b].set(ts)
    out_pad = timestep_embed_pallas(ts_pad, emb["pe"], emb["w1"], emb["b1"],
                                    emb["w2"], emb["b2"],
                                    out_dtype=out_dtype)           # (1,Bp,Dp)
    return out_pad[:, :b, :emb["d"]]                               # (1, B, D)


# ----------------------------------------------------------------------------
if __name__ == "__main__":
    latent_dim = 32
    max_len = 64
    batch = 4

    key = jax.random.PRNGKey(0)
    k_params, k_ts = jax.random.split(key)

    pe = make_positional_encoding(max_len, latent_dim)
    w1, b1, w2, b2 = init_params(k_params, latent_dim)
    emb = prepare_embedder(pe, w1, b1, w2, b2)
    timesteps = jax.random.randint(k_ts, (batch,), 0, max_len, dtype=jnp.int32)

    out = timestep_embedder_forward(timesteps, emb)
    jax.block_until_ready(out)

    # Reference check in plain JAX (f32 params, PyTorch semantics).  Tolerance
    # reflects bf16 weight storage in the kernel (f32 accumulate/bias/SiLU).
    x_ref = jnp.take(pe, timesteps, axis=0)                        # (B, 1, D)
    h_ref = x_ref @ w1 + b1
    h_ref = h_ref * jax.nn.sigmoid(h_ref)
    y_ref = (h_ref @ w2 + b2).transpose(1, 0, 2)                   # (1, B, D)

    assert out.shape == (1, batch, latent_dim)
    assert jnp.allclose(out, y_ref, atol=5e-2, rtol=5e-2), \
        float(jnp.max(jnp.abs(out - y_ref)))

    print("KERNEL_OK")
</pallas_src>

<mosaic_0001>
module attributes {stable_mosaic.version = 11 : i64} {
  func.func @_timestep_embed_kernel(%arg0: i32, %arg1: memref<8xi32, #tpu.memory_space<smem>>, %arg2: memref<64x128xf32, #tpu.memory_space<any>>, %arg3: memref<128x128xbf16, #tpu.memory_space<vmem>>, %arg4: memref<1x128xf32, #tpu.memory_space<vmem>>, %arg5: memref<128x128xbf16, #tpu.memory_space<vmem>>, %arg6: memref<1x128xf32, #tpu.memory_space<vmem>>, %arg7: memref<1x8x128xf32, #tpu.memory_space<vmem>>, %arg8: memref<8x128xf32, #tpu.memory_space<vmem>>, %arg9: memref<8x!tpu.dma_semaphore, #tpu.memory_space<semaphore_mem>>) attributes {dimension_semantics = [#tpu.dimension_semantics<arbitrary>], iteration_bounds = array<i64: 1>, scalar_prefetch = 1 : i64, scratch_operands = 2 : i64, tpu.core_type = #tpu.core_type<tc>, window_params = [{}, {pipeline_mode = #tpu.pipeline_mode<synchronous>, transform_indices = @transform_1, window_bounds = array<i64: 128, 128>}, {pipeline_mode = #tpu.pipeline_mode<synchronous>, transform_indices = @transform_2, window_bounds = array<i64: 1, 128>}, {pipeline_mode = #tpu.pipeline_mode<synchronous>, transform_indices = @transform_3, window_bounds = array<i64: 128, 128>}, {pipeline_mode = #tpu.pipeline_mode<synchronous>, transform_indices = @transform_4, window_bounds = array<i64: 1, 128>}, {pipeline_mode = #tpu.pipeline_mode<synchronous>, transform_indices = @transform_5, window_bounds = array<i64: 1, 8, 128>}]} {
    %c0 = arith.constant 0 : index
    %0 = memref.load %arg1[%c0] : memref<8xi32, #tpu.memory_space<smem>>
    %c0_i32 = arith.constant 0 : i32
    %c0_i32_0 = arith.constant 0 : i32
    %1 = tpu.memref_slice %arg2[%0, %c0_i32_0] : memref<64x128xf32, #tpu.memory_space<any>> -> memref<1x128xf32, #tpu.memory_space<any>>
    %c0_i32_1 = arith.constant 0 : i32
    %c0_i32_2 = arith.constant 0 : i32
    %2 = tpu.memref_slice %arg8[%c0_i32_1, %c0_i32_2] : memref<8x128xf32, #tpu.memory_space<vmem>> -> memref<1x128xf32, #tpu.memory_space<vmem>>
    %3 = tpu.memref_slice %arg9[%c0_i32] : memref<8x!tpu.dma_semaphore, #tpu.memory_space<semaphore_mem>> -> memref<1x!tpu.dma_semaphore, #tpu.memory_space<semaphore_mem>>
    %4 = tpu.memref_squeeze %3 : memref<1x!tpu.dma_semaphore, #tpu.memory_space<semaphore_mem>> -> memref<!tpu.dma_semaphore, #tpu.memory_space<semaphore_mem>>
    tpu.enqueue_dma source(%1 : memref<1x128xf32, #tpu.memory_space<any>>) target(%2 : memref<1x128xf32, #tpu.memory_space<vmem>>) target_semaphore(%4 : memref<!tpu.dma_semaphore, #tpu.memory_space<semaphore_mem>>)
    %c1 = arith.constant 1 : index
    %5 = memref.load %arg1[%c1] : memref<8xi32, #tpu.memory_space<smem>>
    %c1_i32 = arith.constant 1 : i32
    %c0_i32_3 = arith.constant 0 : i32
    %6 = tpu.memref_slice %arg2[%5, %c0_i32_3] : memref<64x128xf32, #tpu.memory_space<any>> -> memref<1x128xf32, #tpu.memory_space<any>>
    %c1_i32_4 = arith.constant 1 : i32
    %c0_i32_5 = arith.constant 0 : i32
    %7 = tpu.memref_slice %arg8[%c1_i32_4, %c0_i32_5] : memref<8x128xf32, #tpu.memory_space<vmem>> -> memref<1x128xf32, #tpu.memory_space<vmem>>
    %8 = tpu.memref_slice %arg9[%c1_i32] : memref<8x!tpu.dma_semaphore, #tpu.memory_space<semaphore_mem>> -> memref<1x!tpu.dma_semaphore, #tpu.memory_space<semaphore_mem>>
    %9 = tpu.memref_squeeze %8 : memref<1x!tpu.dma_semaphore, #tpu.memory_space<semaphore_mem>> -> memref<!tpu.dma_semaphore, #tpu.memory_space<semaphore_mem>>
    tpu.enqueue_dma source(%6 : memref<1x128xf32, #tpu.memory_space<any>>) target(%7 : memref<1x128xf32, #tpu.memory_space<vmem>>) target_semaphore(%9 : memref<!tpu.dma_semaphore, #tpu.memory_space<semaphore_mem>>)
    %c2 = arith.constant 2 : index
    %10 = memref.load %arg1[%c2] : memref<8xi32, #tpu.memory_space<smem>>
    %c2_i32 = arith.constant 2 : i32
    %c0_i32_6 = arith.constant 0 : i32
    %11 = tpu.memref_slice %arg2[%10, %c0_i32_6] : memref<64x128xf32, #tpu.memory_space<any>> -> memref<1x128xf32, #tpu.memory_space<any>>
    %c2_i32_7 = arith.constant 2 : i32
    %c0_i32_8 = arith.constant 0 : i32
    %12 = tpu.memref_slice %arg8[%c2_i32_7, %c0_i32_8] : memref<8x128xf32, #tpu.memory_space<vmem>> -> memref<1x128xf32, #tpu.memory_space<vmem>>
    %13 = tpu.memref_slice %arg9[%c2_i32] : memref<8x!tpu.dma_semaphore, #tpu.memory_space<semaphore_mem>> -> memref<1x!tpu.dma_semaphore, #tpu.memory_space<semaphore_mem>>
    %14 = tpu.memref_squeeze %13 : memref<1x!tpu.dma_semaphore, #tpu.memory_space<semaphore_mem>> -> memref<!tpu.dma_semaphore, #tpu.memory_space<semaphore_mem>>
    tpu.enqueue_dma source(%11 : memref<1x128xf32, #tpu.memory_space<any>>) target(%12 : memref<1x128xf32, #tpu.memory_space<vmem>>) target_semaphore(%14 : memref<!tpu.dma_semaphore, #tpu.memory_space<semaphore_mem>>)
    %c3 = arith.constant 3 : index
    %15 = memref.load %arg1[%c3] : memref<8xi32, #tpu.memory_space<smem>>
    %c3_i32 = arith.constant 3 : i32
    %c0_i32_9 = arith.constant 0 : i32
    %16 = tpu.memref_slice %arg2[%15, %c0_i32_9] : memref<64x128xf32, #tpu.memory_space<any>> -> memref<1x128xf32, #tpu.memory_space<any>>
    %c3_i32_10 = arith.constant 3 : i32
    %c0_i32_11 = arith.constant 0 : i32
    %17 = tpu.memref_slice %arg8[%c3_i32_10, %c0_i32_11] : memref<8x128xf32, #tpu.memory_space<vmem>> -> memref<1x128xf32, #tpu.memory_space<vmem>>
    %18 = tpu.memref_slice %arg9[%c3_i32] : memref<8x!tpu.dma_semaphore, #tpu.memory_space<semaphore_mem>> -> memref<1x!tpu.dma_semaphore, #tpu.memory_space<semaphore_mem>>
    %19 = tpu.memref_squeeze %18 : memref<1x!tpu.dma_semaphore, #tpu.memory_space<semaphore_mem>> -> memref<!tpu.dma_semaphore, #tpu.memory_space<semaphore_mem>>
    tpu.enqueue_dma source(%16 : memref<1x128xf32, #tpu.memory_space<any>>) target(%17 : memref<1x128xf32, #tpu.memory_space<vmem>>) target_semaphore(%19 : memref<!tpu.dma_semaphore, #tpu.memory_space<semaphore_mem>>)
    %c4 = arith.constant 4 : index
    %20 = memref.load %arg1[%c4] : memref<8xi32, #tpu.memory_space<smem>>
    %c4_i32 = arith.constant 4 : i32
    %c0_i32_12 = arith.constant 0 : i32
    %21 = tpu.memref_slice %arg2[%20, %c0_i32_12] : memref<64x128xf32, #tpu.memory_space<any>> -> memref<1x128xf32, #tpu.memory_space<any>>
    %c4_i32_13 = arith.constant 4 : i32
    %c0_i32_14 = arith.constant 0 : i32
    %22 = tpu.memref_slice %arg8[%c4_i32_13, %c0_i32_14] : memref<8x128xf32, #tpu.memory_space<vmem>> -> memref<1x128xf32, #tpu.memory_space<vmem>>
    %23 = tpu.memref_slice %arg9[%c4_i32] : memref<8x!tpu.dma_semaphore, #tpu.memory_space<semaphore_mem>> -> memref<1x!tpu.dma_semaphore, #tpu.memory_space<semaphore_mem>>
    %24 = tpu.memref_squeeze %23 : memref<1x!tpu.dma_semaphore, #tpu.memory_space<semaphore_mem>> -> memref<!tpu.dma_semaphore, #tpu.memory_space<semaphore_mem>>
    tpu.enqueue_dma source(%21 : memref<1x128xf32, #tpu.memory_space<any>>) target(%22 : memref<1x128xf32, #tpu.memory_space<vmem>>) target_semaphore(%24 : memref<!tpu.dma_semaphore, #tpu.memory_space<semaphore_mem>>)
    %c5 = arith.constant 5 : index
    %25 = memref.load %arg1[%c5] : memref<8xi32, #tpu.memory_space<smem>>
    %c5_i32 = arith.constant 5 : i32
    %c0_i32_15 = arith.constant 0 : i32
    %26 = tpu.memref_slice %arg2[%25, %c0_i32_15] : memref<64x128xf32, #tpu.memory_space<any>> -> memref<1x128xf32, #tpu.memory_space<any>>
    %c5_i32_16 = arith.constant 5 : i32
    %c0_i32_17 = arith.constant 0 : i32
    %27 = tpu.memref_slice %arg8[%c5_i32_16, %c0_i32_17] : memref<8x128xf32, #tpu.memory_space<vmem>> -> memref<1x128xf32, #tpu.memory_space<vmem>>
    %28 = tpu.memref_slice %arg9[%c5_i32] : memref<8x!tpu.dma_semaphore, #tpu.memory_space<semaphore_mem>> -> memref<1x!tpu.dma_semaphore, #tpu.memory_space<semaphore_mem>>
    %29 = tpu.memref_squeeze %28 : memref<1x!tpu.dma_semaphore, #tpu.memory_space<semaphore_mem>> -> memref<!tpu.dma_semaphore, #tpu.memory_space<semaphore_mem>>
    tpu.enqueue_dma source(%26 : memref<1x128xf32, #tpu.memory_space<any>>) target(%27 : memref<1x128xf32, #tpu.memory_space<vmem>>) target_semaphore(%29 : memref<!tpu.dma_semaphore, #tpu.memory_space<semaphore_mem>>)
    %c6 = arith.constant 6 : index
    %30 = memref.load %arg1[%c6] : memref<8xi32, #tpu.memory_space<smem>>
    %c6_i32 = arith.constant 6 : i32
    %c0_i32_18 = arith.constant 0 : i32
    %31 = tpu.memref_slice %arg2[%30, %c0_i32_18] : memref<64x128xf32, #tpu.memory_space<any>> -> memref<1x128xf32, #tpu.memory_space<any>>
    %c6_i32_19 = arith.constant 6 : i32
    %c0_i32_20 = arith.constant 0 : i32
    %32 = tpu.memref_slice %arg8[%c6_i32_19, %c0_i32_20] : memref<8x128xf32, #tpu.memory_space<vmem>> -> memref<1x128xf32, #tpu.memory_space<vmem>>
    %33 = tpu.memref_slice %arg9[%c6_i32] : memref<8x!tpu.dma_semaphore, #tpu.memory_space<semaphore_mem>> -> memref<1x!tpu.dma_semaphore, #tpu.memory_space<semaphore_mem>>
    %34 = tpu.memref_squeeze %33 : memref<1x!tpu.dma_semaphore, #tpu.memory_space<semaphore_mem>> -> memref<!tpu.dma_semaphore, #tpu.memory_space<semaphore_mem>>
    tpu.enqueue_dma source(%31 : memref<1x128xf32, #tpu.memory_space<any>>) target(%32 : memref<1x128xf32, #tpu.memory_space<vmem>>) target_semaphore(%34 : memref<!tpu.dma_semaphore, #tpu.memory_space<semaphore_mem>>)
    %c7 = arith.constant 7 : index
    %35 = memref.load %arg1[%c7] : memref<8xi32, #tpu.memory_space<smem>>
    %c7_i32 = arith.constant 7 : i32
    %c0_i32_21 = arith.constant 0 : i32
    %36 = tpu.memref_slice %arg2[%35, %c0_i32_21] : memref<64x128xf32, #tpu.memory_space<any>> -> memref<1x128xf32, #tpu.memory_space<any>>
    %c7_i32_22 = arith.constant 7 : i32
    %c0_i32_23 = arith.constant 0 : i32
    %37 = tpu.memref_slice %arg8[%c7_i32_22, %c0_i32_23] : memref<8x128xf32, #tpu.memory_space<vmem>> -> memref<1x128xf32, #tpu.memory_space<vmem>>
    %38 = tpu.memref_slice %arg9[%c7_i32] : memref<8x!tpu.dma_semaphore, #tpu.memory_space<semaphore_mem>> -> memref<1x!tpu.dma_semaphore, #tpu.memory_space<semaphore_mem>>
    %39 = tpu.memref_squeeze %38 : memref<1x!tpu.dma_semaphore, #tpu.memory_space<semaphore_mem>> -> memref<!tpu.dma_semaphore, #tpu.memory_space<semaphore_mem>>
    tpu.enqueue_dma source(%36 : memref<1x128xf32, #tpu.memory_space<any>>) target(%37 : memref<1x128xf32, #tpu.memory_space<vmem>>) target_semaphore(%39 : memref<!tpu.dma_semaphore, #tpu.memory_space<semaphore_mem>>)
    %c0_i32_24 = arith.constant 0 : i32
    %c0_i32_25 = arith.constant 0 : i32
    %40 = tpu.memref_slice %arg2[%0, %c0_i32_25] : memref<64x128xf32, #tpu.memory_space<any>> -> memref<1x128xf32, #tpu.memory_space<any>>
    %c0_i32_26 = arith.constant 0 : i32
    %c0_i32_27 = arith.constant 0 : i32
    %41 = tpu.memref_slice %arg8[%c0_i32_26, %c0_i32_27] : memref<8x128xf32, #tpu.memory_space<vmem>> -> memref<1x128xf32, #tpu.memory_space<vmem>>
    %42 = tpu.memref_slice %arg9[%c0_i32_24] : memref<8x!tpu.dma_semaphore, #tpu.memory_space<semaphore_mem>> -> memref<1x!tpu.dma_semaphore, #tpu.memory_space<semaphore_mem>>
    %43 = tpu.memref_squeeze %42 : memref<1x!tpu.dma_semaphore, #tpu.memory_space<semaphore_mem>> -> memref<!tpu.dma_semaphore, #tpu.memory_space<semaphore_mem>>
    tpu.wait_dma2 semaphore(%43 : memref<!tpu.dma_semaphore, #tpu.memory_space<semaphore_mem>>) src(%40 : memref<1x128xf32, #tpu.memory_space<any>>) dst(%41 : memref<1x128xf32, #tpu.memory_space<vmem>>)
    %c1_i32_28 = arith.constant 1 : i32
    %c0_i32_29 = arith.constant 0 : i32
    %44 = tpu.memref_slice %arg2[%5, %c0_i32_29] : memref<64x128xf32, #tpu.memory_space<any>> -> memref<1x128xf32, #tpu.memory_space<any>>
    %c1_i32_30 = arith.constant 1 : i32
    %c0_i32_31 = arith.constant 0 : i32
    %45 = tpu.memref_slice %arg8[%c1_i32_30, %c0_i32_31] : memref<8x128xf32, #tpu.memory_space<vmem>> -> memref<1x128xf32, #tpu.memory_space<vmem>>
    %46 = tpu.memref_slice %arg9[%c1_i32_28] : memref<8x!tpu.dma_semaphore, #tpu.memory_space<semaphore_mem>> -> memref<1x!tpu.dma_semaphore, #tpu.memory_space<semaphore_mem>>
    %47 = tpu.memref_squeeze %46 : memref<1x!tpu.dma_semaphore, #tpu.memory_space<semaphore_mem>> -> memref<!tpu.dma_semaphore, #tpu.memory_space<semaphore_mem>>
    tpu.wait_dma2 semaphore(%47 : memref<!tpu.dma_semaphore, #tpu.memory_space<semaphore_mem>>) src(%44 : memref<1x128xf32, #tpu.memory_space<any>>) dst(%45 : memref<1x128xf32, #tpu.memory_space<vmem>>)
    %c2_i32_32 = arith.constant 2 : i32
    %c0_i32_33 = arith.constant 0 : i32
    %48 = tpu.memref_slice %arg2[%10, %c0_i32_33] : memref<64x128xf32, #tpu.memory_space<any>> -> memref<1x128xf32, #tpu.memory_space<any>>
    %c2_i32_34 = arith.constant 2 : i32
    %c0_i32_35 = arith.constant 0 : i32
    %49 = tpu.memref_slice %arg8[%c2_i32_34, %c0_i32_35] : memref<8x128xf32, #tpu.memory_space<vmem>> -> memref<1x128xf32, #tpu.memory_space<vmem>>
    %50 = tpu.memref_slice %arg9[%c2_i32_32] : memref<8x!tpu.dma_semaphore, #tpu.memory_space<semaphore_mem>> -> memref<1x!tpu.dma_semaphore, #tpu.memory_space<semaphore_mem>>
    %51 = tpu.memref_squeeze %50 : memref<1x!tpu.dma_semaphore, #tpu.memory_space<semaphore_mem>> -> memref<!tpu.dma_semaphore, #tpu.memory_space<semaphore_mem>>
    tpu.wait_dma2 semaphore(%51 : memref<!tpu.dma_semaphore, #tpu.memory_space<semaphore_mem>>) src(%48 : memref<1x128xf32, #tpu.memory_space<any>>) dst(%49 : memref<1x128xf32, #tpu.memory_space<vmem>>)
    %c3_i32_36 = arith.constant 3 : i32
    %c0_i32_37 = arith.constant 0 : i32
    %52 = tpu.memref_slice %arg2[%15, %c0_i32_37] : memref<64x128xf32, #tpu.memory_space<any>> -> memref<1x128xf32, #tpu.memory_space<any>>
    %c3_i32_38 = arith.constant 3 : i32
    %c0_i32_39 = arith.constant 0 : i32
    %53 = tpu.memref_slice %arg8[%c3_i32_38, %c0_i32_39] : memref<8x128xf32, #tpu.memory_space<vmem>> -> memref<1x128xf32, #tpu.memory_space<vmem>>
    %54 = tpu.memref_slice %arg9[%c3_i32_36] : memref<8x!tpu.dma_semaphore, #tpu.memory_space<semaphore_mem>> -> memref<1x!tpu.dma_semaphore, #tpu.memory_space<semaphore_mem>>
    %55 = tpu.memref_squeeze %54 : memref<1x!tpu.dma_semaphore, #tpu.memory_space<semaphore_mem>> -> memref<!tpu.dma_semaphore, #tpu.memory_space<semaphore_mem>>
    tpu.wait_dma2 semaphore(%55 : memref<!tpu.dma_semaphore, #tpu.memory_space<semaphore_mem>>) src(%52 : memref<1x128xf32, #tpu.memory_space<any>>) dst(%53 : memref<1x128xf32, #tpu.memory_space<vmem>>)
    %c4_i32_40 = arith.constant 4 : i32
    %c0_i32_41 = arith.constant 0 : i32
    %56 = tpu.memref_slice %arg2[%20, %c0_i32_41] : memref<64x128xf32, #tpu.memory_space<any>> -> memref<1x128xf32, #tpu.memory_space<any>>
    %c4_i32_42 = arith.constant 4 : i32
    %c0_i32_43 = arith.constant 0 : i32
    %57 = tpu.memref_slice %arg8[%c4_i32_42, %c0_i32_43] : memref<8x128xf32, #tpu.memory_space<vmem>> -> memref<1x128xf32, #tpu.memory_space<vmem>>
    %58 = tpu.memref_slice %arg9[%c4_i32_40] : memref<8x!tpu.dma_semaphore, #tpu.memory_space<semaphore_mem>> -> memref<1x!tpu.dma_semaphore, #tpu.memory_space<semaphore_mem>>
    %59 = tpu.memref_squeeze %58 : memref<1x!tpu.dma_semaphore, #tpu.memory_space<semaphore_mem>> -> memref<!tpu.dma_semaphore, #tpu.memory_space<semaphore_mem>>
    tpu.wait_dma2 semaphore(%59 : memref<!tpu.dma_semaphore, #tpu.memory_space<semaphore_mem>>) src(%56 : memref<1x128xf32, #tpu.memory_space<any>>) dst(%57 : memref<1x128xf32, #tpu.memory_space<vmem>>)
    %c5_i32_44 = arith.constant 5 : i32
    %c0_i32_45 = arith.constant 0 : i32
    %60 = tpu.memref_slice %arg2[%25, %c0_i32_45] : memref<64x128xf32, #tpu.memory_space<any>> -> memref<1x128xf32, #tpu.memory_space<any>>
    %c5_i32_46 = arith.constant 5 : i32
    %c0_i32_47 = arith.constant 0 : i32
    %61 = tpu.memref_slice %arg8[%c5_i32_46, %c0_i32_47] : memref<8x128xf32, #tpu.memory_space<vmem>> -> memref<1x128xf32, #tpu.memory_space<vmem>>
    %62 = tpu.memref_slice %arg9[%c5_i32_44] : memref<8x!tpu.dma_semaphore, #tpu.memory_space<semaphore_mem>> -> memref<1x!tpu.dma_semaphore, #tpu.memory_space<semaphore_mem>>
    %63 = tpu.memref_squeeze %62 : memref<1x!tpu.dma_semaphore, #tpu.memory_space<semaphore_mem>> -> memref<!tpu.dma_semaphore, #tpu.memory_space<semaphore_mem>>
    tpu.wait_dma2 semaphore(%63 : memref<!tpu.dma_semaphore, #tpu.memory_space<semaphore_mem>>) src(%60 : memref<1x128xf32, #tpu.memory_space<any>>) dst(%61 : memref<1x128xf32, #tpu.memory_space<vmem>>)
    %c6_i32_48 = arith.constant 6 : i32
    %c0_i32_49 = arith.constant 0 : i32
    %64 = tpu.memref_slice %arg2[%30, %c0_i32_49] : memref<64x128xf32, #tpu.memory_space<any>> -> memref<1x128xf32, #tpu.memory_space<any>>
    %c6_i32_50 = arith.constant 6 : i32
    %c0_i32_51 = arith.constant 0 : i32
    %65 = tpu.memref_slice %arg8[%c6_i32_50, %c0_i32_51] : memref<8x128xf32, #tpu.memory_space<vmem>> -> memref<1x128xf32, #tpu.memory_space<vmem>>
    %66 = tpu.memref_slice %arg9[%c6_i32_48] : memref<8x!tpu.dma_semaphore, #tpu.memory_space<semaphore_mem>> -> memref<1x!tpu.dma_semaphore, #tpu.memory_space<semaphore_mem>>
    %67 = tpu.memref_squeeze %66 : memref<1x!tpu.dma_semaphore, #tpu.memory_space<semaphore_mem>> -> memref<!tpu.dma_semaphore, #tpu.memory_space<semaphore_mem>>
    tpu.wait_dma2 semaphore(%67 : memref<!tpu.dma_semaphore, #tpu.memory_space<semaphore_mem>>) src(%64 : memref<1x128xf32, #tpu.memory_space<any>>) dst(%65 : memref<1x128xf32, #tpu.memory_space<vmem>>)
    %c7_i32_52 = arith.constant 7 : i32
    %c0_i32_53 = arith.constant 0 : i32
    %68 = tpu.memref_slice %arg2[%35, %c0_i32_53] : memref<64x128xf32, #tpu.memory_space<any>> -> memref<1x128xf32, #tpu.memory_space<any>>
    %c7_i32_54 = arith.constant 7 : i32
    %c0_i32_55 = arith.constant 0 : i32
    %69 = tpu.memref_slice %arg8[%c7_i32_54, %c0_i32_55] : memref<8x128xf32, #tpu.memory_space<vmem>> -> memref<1x128xf32, #tpu.memory_space<vmem>>
    %70 = tpu.memref_slice %arg9[%c7_i32_52] : memref<8x!tpu.dma_semaphore, #tpu.memory_space<semaphore_mem>> -> memref<1x!tpu.dma_semaphore, #tpu.memory_space<semaphore_mem>>
    %71 = tpu.memref_squeeze %70 : memref<1x!tpu.dma_semaphore, #tpu.memory_space<semaphore_mem>> -> memref<!tpu.dma_semaphore, #tpu.memory_space<semaphore_mem>>
    tpu.wait_dma2 semaphore(%71 : memref<!tpu.dma_semaphore, #tpu.memory_space<semaphore_mem>>) src(%68 : memref<1x128xf32, #tpu.memory_space<any>>) dst(%69 : memref<1x128xf32, #tpu.memory_space<vmem>>)
    %c0_56 = arith.constant 0 : index
    %c0_57 = arith.constant 0 : index
    %72 = vector.load %arg8[%c0_56, %c0_57] : memref<8x128xf32, #tpu.memory_space<vmem>>, vector<8x128xf32>
    %73 = arith.truncf %72 : vector<8x128xf32> to vector<8x128xbf16>
    %c0_58 = arith.constant 0 : index
    %c0_59 = arith.constant 0 : index
    %74 = vector.load %arg3[%c0_58, %c0_59] : memref<128x128xbf16, #tpu.memory_space<vmem>>, vector<128x128xbf16>
    %cst = arith.constant dense<0.000000e+00> : vector<8x128xf32>
    %75 = tpu.matmul %73, %74, %cst {dimension_numbers = #tpu.dot_dimension_numbers<[1], [0], [0], [1], [0, 0, 1, 1], [], []>} : vector<8x128xbf16>, vector<128x128xbf16>, vector<8x128xf32> -> vector<8x128xf32>
    %c0_60 = arith.constant 0 : index
    %c0_61 = arith.constant 0 : index
    %76 = vector.load %arg4[%c0_60, %c0_61] : memref<1x128xf32, #tpu.memory_space<vmem>>, vector<1x128xf32>
    %77 = vector.broadcast %76 : vector<1x128xf32> to vector<8x128xf32>
    %78 = arith.addf %75, %77 : vector<8x128xf32>
    %79 = arith.negf %78 : vector<8x128xf32>
    %80 = math.exp %79 : vector<8x128xf32>
    %cst_62 = arith.constant 1.000000e+00 : f32
    %81 = vector.broadcast %cst_62 : f32 to vector<8x128xf32>
    %82 = arith.addf %81, %80 : vector<8x128xf32>
    %83 = arith.divf %81, %82 : vector<8x128xf32>
    %84 = arith.mulf %78, %83 : vector<8x128xf32>
    %85 = arith.truncf %84 : vector<8x128xf32> to vector<8x128xbf16>
    %c0_63 = arith.constant 0 : index
    %c0_64 = arith.constant 0 : index
    %86 = vector.load %arg5[%c0_63, %c0_64] : memref<128x128xbf16, #tpu.memory_space<vmem>>, vector<128x128xbf16>
    %cst_65 = arith.constant dense<0.000000e+00> : vector<8x128xf32>
    %87 = tpu.matmul %85, %86, %cst_65 {dimension_numbers = #tpu.dot_dimension_numbers<[1], [0], [0], [1], [0, 0, 1, 1], [], []>} : vector<8x128xbf16>, vector<128x128xbf16>, vector<8x128xf32> -> vector<8x128xf32>
    %c0_66 = arith.constant 0 : index
    %c0_67 = arith.constant 0 : index
    %88 = vector.load %arg6[%c0_66, %c0_67] : memref<1x128xf32, #tpu.memory_space<vmem>>, vector<1x128xf32>
    %89 = vector.broadcast %88 : vector<1x128xf32> to vector<8x128xf32>
    %90 = arith.addf %87, %89 : vector<8x128xf32>
    %c0_68 = arith.constant 0 : index
    %c0_69 = arith.constant 0 : index
    %c0_70 = arith.constant 0 : index
    %91 = vector.load %arg7[%c0_68, %c0_69, %c0_70] : memref<1x8x128xf32, #tpu.memory_space<vmem>>, vector<1x8x128xf32>
    %92 = vector.shape_cast %91 : vector<1x8x128xf32> to vector<8x128xf32>
    %93 = vector.shape_cast %90 : vector<8x128xf32> to vector<1x8x128xf32>
    tpu.vector_store %arg7[%c0_68, %c0_69, %c0_70], %93 {strides = array<i32>} : memref<1x8x128xf32, #tpu.memory_space<vmem>>, vector<1x8x128xf32>,
    return
  }
  func.func @transform_1(%arg0: i32, %arg1: memref<8xi32, #tpu.memory_space<smem>>) -> (i32, i32) {
    %c0_i32 = arith.constant 0 : i32
    %c0_i32_0 = arith.constant 0 : i32
    %c0_i32_1 = arith.constant 0 : i32
    return %c0_i32, %c0_i32_0 : i32, i32
  }
  func.func @transform_2(%arg0: i32, %arg1: memref<8xi32, #tpu.memory_space<smem>>) -> (i32, i32) {
    %c0_i32 = arith.constant 0 : i32
    %c0_i32_0 = arith.constant 0 : i32
    %c0_i32_1 = arith.constant 0 : i32
    return %c0_i32, %c0_i32_0 : i32, i32
  }
  func.func @transform_3(%arg0: i32, %arg1: memref<8xi32, #tpu.memory_space<smem>>) -> (i32, i32) {
    %c0_i32 = arith.constant 0 : i32
    %c0_i32_0 = arith.constant 0 : i32
    %c0_i32_1 = arith.constant 0 : i32
    return %c0_i32, %c0_i32_0 : i32, i32
  }
  func.func @transform_4(%arg0: i32, %arg1: memref<8xi32, #tpu.memory_space<smem>>) -> (i32, i32) {
    %c0_i32 = arith.constant 0 : i32
    %c0_i32_0 = arith.constant 0 : i32
    %c0_i32_1 = arith.constant 0 : i32
    return %c0_i32, %c0_i32_0 : i32, i32
  }
  func.func @transform_5(%arg0: i32, %arg1: memref<8xi32, #tpu.memory_space<smem>>) -> (i32, i32, i32) {
    %c0_i32 = arith.constant 0 : i32
    %c0_i32_0 = arith.constant 0 : i32
    %c0_i32_1 = arith.constant 0 : i32
    %c0_i32_2 = arith.constant 0 : i32
    return %c0_i32, %c0_i32_0, %c0_i32_1 : i32, i32, i32
  }
}

</mosaic_0001>

<bundles_post_ra>
// kernel: tpu_custom_call.1
= control target key start
LH: loop header
LB: loop body
LE: loop exit
PB: predicated region body
PF: predicated region fallthrough
CT: control target
= control target key end

     0   :  { %s1180_s0 = inlined_call_operand.hbm [shape: s32[8], index: 0, kind: input, shape index: {}]   ;;  %s1181_s1 = inlined_call_operand.hbm [shape: f32[64,128], index: 1, kind: input, shape index: {}]   ;;  %s1182_s2 = inlined_call_operand.hbm [shape: bf16[128,128], index: 2, kind: input, shape index: {}]   ;;  %s1183_s3 = inlined_call_operand.vmem [shape: f32[1,128], index: 3, kind: input, shape index: {}]   ;;  %s1184_s4 = inlined_call_operand.hbm [shape: bf16[128,128], index: 4, kind: input, shape index: {}]   ;;  %s1185_s5 = inlined_call_operand.vmem [shape: f32[1,128], index: 5, kind: input, shape index: {}]   ;;  %s1186_s6 = inlined_call_operand.hbm [shape: f32[1,8,128], index: 6, kind: output, shape index: {}]  }
   0x1   :  { %s652_s23 = scalar_lea.hbm %s1180_s0, 16 }
   0x2   :  { %p653_p0 = scmp.ne.s32.totalorder %s1180_s0, %s652_s23  ;;  %p656_p1 = scmp.lt.u32.totalorder %s652_s23, %s1180_s0 }
   0x4   :  { %p658_p2 = pnand %p656_p1, %p653_p0 }
   0x6   :  { %661 = shalt.err (!%p658_p2)  }
   0x7   :  { %s944_s28 = smov [#allocation5]  }
   0x8   :  { %12 = dma.hbm_to_smem %s1180_s0, 16, %s944_s28, [#allocation4] }
   0x9   :  { %920 = dma.done.wait [#allocation4], 16 }
   0xa   :  { %921 = vsyncadd [#allocation4], 4294967280 }
   0xb   :  { %14 = sfence }
   0xc   :  { %15 = vsyncpa [#allocation7], 0 }
   0xd   :  { %16 = vsyncpa [#allocation10], 0 }
   0xe   :  { %17 = vsyncpa [#allocation8], 0  ;;  %s945_s7 = smov [#allocation6]   ;;  %s662_s11 = scalar_lea.hbm %s1182_s2, 1024 }
   0xf   :  { %s23_s8 = sshll.u32 %s945_s7, 4  ;;  %p663_p3 = scmp.ne.s32.totalorder %s1182_s2, %s662_s11  ;;  %s24_s8 = int_to_ptr.vmem [resolvable:$true] %s23_s8 }
  0x10   :  { %p666_p4 = scmp.lt.u32.totalorder %s662_s11, %s1182_s2 }
  0x12   :  { %p668_p5 = pnand %p666_p4, %p663_p3 }
  0x14   :  { %671 = shalt.err (!%p668_p5)
}
  0x15   :  { %s672_s0 = scalar_lea.vmem %s24_s8, 1024  ;;  %p677_p7 = scmp.lt.s32.totalorder %s24_s8, %s24_s8 }
  0x16   :  { %p673_p6 = scmp.ne.s32.totalorder %s24_s8, %s672_s0  ;;  %p678_p8 = scmp.lt.s32.totalorder %s672_s0, %s672_s0 }
  0x18   :  { %p679_p9 = por %p678_p8, %p677_p7 }
  0x1a   :  { %p680_p10 = pnand %p679_p9, %p673_p6 }
  0x1c   :  { %683 = shalt.err (!%p680_p10)
}
  0x1d   :  { %s946_s16 = smov 64   ;;  %s947_s17 = smov 4  }
  0x1e   :  { %29 = dma.hbm_to_vmem [thread:$0]  %s1182_s2, 1024, %s24_s8, [#allocation7], %s946_s16, %s946_s16, %s947_s17  }
  0x1f   :  { %s948_s20 = smov [#allocation9]   ;;  %s684_s24 = scalar_lea.hbm %s1184_s4, 1024 }
  0x20   :  { %s37_s21 = sshll.u32 %s948_s20, 4  ;;  %p685_p11 = scmp.ne.s32.totalorder %s1184_s4, %s684_s24  ;;  %s38_s21 = int_to_ptr.vmem [resolvable:$true] %s37_s21 }
  0x21   :  { %p688_p12 = scmp.lt.u32.totalorder %s684_s24, %s1184_s4 }
  0x23   :  { %p690_p13 = pnand %p688_p12, %p685_p11 }
  0x25   :  { %693 = shalt.err (!%p690_p13)
}
  0x26   :  { %s694_s29 = scalar_lea.vmem %s38_s21, 1024  ;;  %p699_p1 = scmp.lt.s32.totalorder %s38_s21, %s38_s21 }
  0x27   :  { %p695_p0 = scmp.ne.s32.totalorder %s38_s21, %s694_s29  ;;  %p700_p2 = scmp.lt.s32.totalorder %s694_s29, %s694_s29 }
  0x29   :  { %p701_p3 = por %p700_p2, %p699_p1 }
  0x2b   :  { %p702_p4 = pnand %p701_p3, %p695_p0 }
  0x2d   :  { %705 = shalt.err (!%p702_p4)
}
  0x2e   :  { %43 = dma.hbm_to_vmem [thread:$0]  %s1184_s4, 1024, %s38_s21, [#allocation10], %s946_s16, %s946_s16, %s947_s17  }
  0x2f   :  { %922 = dma.done.wait [#allocation7], 1024  }
  0x30   :  { %923 = vsyncadd [#allocation7], 4294966272 }
  0x31   :  { %924 = dma.done.wait [#allocation10], 1024  }
  0x32   :  { %925 = vsyncadd [#allocation10], 4294966272  ;;  %s53_s7 = sld [smem:[#allocation5]]  ;;  %s949_s8 = smov [#allocation2]  }
  0x33   :  { %s63_s9 = sshll.u32 %s949_s8, 4  ;;  %s1033_s10 = sld [smem:[#allocation5 + $0x1]]  ;;  %s1031_s9 = int_to_ptr.vmem [resolvable:$true] %s63_s9 }
  0x34   :  { %s950_s11 = smov [#allocation2 + $0x1]   ;;  %s1035_s13 = sld [smem:[#allocation5 + $0x2]] }
  0x35   :  { %s79_s12 = sshll.u32 %s950_s11, 4  ;;  %s951_s14 = smov [#allocation2 + $0x2]   ;;  %s1037_s12 = int_to_ptr.vmem [resolvable:$true] %s79_s12 }
  0x36   :  { %s95_s4 = sshll.u32 %s951_s14, 4  ;;  %s1039_s15 = sld [smem:[#allocation5 + $0x3]]  ;;  %s1041_s4 = int_to_ptr.vmem [resolvable:$true] %s95_s4 }
  0x37   :  { %s952_s16 = smov [#allocation2 + $0x3]   ;;  %s1052_s25 = scalar_lea.hbm %s1181_s1, 1024 }
  0x38   :  { %s516_s0 = sshll.u32 %s53_s7, 4  ;;  %s1043_s17 = sshll.u32 %s952_s16, 4  ;;  %s112_s17 = int_to_ptr.vmem [resolvable:$true] %s1043_s17 }
  0x39   :  { %s55_s20 = scalar_lea.hbm %s1181_s1, %s516_s0  ;;  %s518_s21 = sshll.u32 %s1033_s10, 4 }
  0x3a   :  { %s706_s22 = scalar_lea.hbm %s55_s20, 16  ;;  %p709_p6 = scmp.lt.u32.totalorder %s55_s20, %s1181_s1 }
  0x3b   :  { %p707_p5 = scmp.ne.s32.totalorder %s55_s20, %s706_s22  ;;  %p710_p7 = scmp.lt.u32.totalorder %s1052_s25, %s706_s22 }
  0x3c   :  { %p712_p9 = scmp.lt.u32.totalorder %s706_s22, %s55_s20 }
  0x3d   :  { %p711_p8 = por %p710_p7, %p709_p6 }
  0x3f   :  { %p713_p10 = por %p712_p9, %p711_p8 }
  0x41   :  { %p714_p11 = pnand %p713_p10, %p707_p5 }
  0x43   :  { %717 = shalt.err (!%p714_p11)  }
  0x44   :  { %s718_s28 = scalar_lea.vmem %s1031_s9, 16  ;;  %s1061_s29 = scalar_lea.vmem %s1031_s9, 128 }
  0x45   :  { %p719_p12 = scmp.ne.s32.totalorder %s1031_s9, %s718_s28  ;;  %p723_p13 = scmp.lt.s32.totalorder %s1031_s9, %s1031_s9 }
  0x46   :  { %p724_p0 = scmp.lt.s32.totalorder %s1061_s29, %s718_s28 }
  0x48   :  { %p725_p1 = por %p724_p0, %p723_p13 }
  0x4a   :  { %p726_p2 = pnand %p725_p1, %p719_p12 }
  0x4c   :  { %729 = shalt.err (!%p726_p2)  }
  0x4d   :  { %66 = dma.hbm_to_vmem [thread:$0]  %s55_s20, 16, %s1031_s9, [#allocation3] }
  0x4e   :  { %s69_s7 = scalar_lea.hbm %s1181_s1, %s518_s21  ;;  %s520_s8 = sshll.u32 %s1035_s13, 4 }
  0x4f   :  { %s730_s10 = scalar_lea.hbm %s69_s7, 16  ;;  %p733_p4 = scmp.lt.u32.totalorder %s69_s7, %s1181_s1 }
  0x50   :  { %p731_p3 = scmp.ne.s32.totalorder %s69_s7, %s730_s10  ;;  %p734_p5 = scmp.lt.u32.totalorder %s1052_s25, %s730_s10 }
  0x51   :  { %p736_p7 = scmp.lt.u32.totalorder %s730_s10, %s69_s7 }
  0x52   :  { %p735_p6 = por %p734_p5, %p733_p4 }
  0x54   :  { %p737_p8 = por %p736_p7, %p735_p6 }
  0x56   :  { %p738_p9 = pnand %p737_p8, %p731_p3 }
  0x58   :  { %741 = shalt.err (!%p738_p9)  }
  0x59   :  { %s742_s0 = scalar_lea.vmem %s1037_s12, 16  ;;  %p747_p11 = scmp.lt.s32.totalorder %s1037_s12, %s1031_s9 }
  0x5a   :  { %p743_p10 = scmp.ne.s32.totalorder %s1037_s12, %s742_s0  ;;  %p748_p12 = scmp.lt.s32.totalorder %s1061_s29, %s742_s0 }
  0x5c   :  { %p749_p13 = por %p748_p12, %p747_p11 }
  0x5e   :  { %p750_p0 = pnand %p749_p13, %p743_p10 }
  0x60   :  { %753 = shalt.err (!%p750_p0)  }
  0x61   :  { %82 = dma.hbm_to_vmem [thread:$0]  %s69_s7, 16, %s1037_s12, [#allocation3 + $0x1] }
  0x62   :  { %s85_s18 = scalar_lea.hbm %s1181_s1, %s520_s8  ;;  %s522_s19 = sshll.u32 %s1039_s15, 4 }
  0x63   :  { %s754_s20 = scalar_lea.hbm %s85_s18, 16  ;;  %p757_p2 = scmp.lt.u32.totalorder %s85_s18, %s1181_s1 }
  0x64   :  { %p755_p1 = scmp.ne.s32.totalorder %s85_s18, %s754_s20  ;;  %p758_p3 = scmp.lt.u32.totalorder %s1052_s25, %s754_s20 }
  0x65   :  { %p760_p5 = scmp.lt.u32.totalorder %s754_s20, %s85_s18 }
  0x66   :  { %p759_p4 = por %p758_p3, %p757_p2 }
  0x68   :  { %p761_p6 = por %p760_p5, %p759_p4 }
  0x6a   :  { %p762_p7 = pnand %p761_p6, %p755_p1 }
  0x6c   :  { %765 = shalt.err (!%p762_p7)  }
  0x6d   :  { %s766_s12 = scalar_lea.vmem %s1041_s4, 16  ;;  %p771_p9 = scmp.lt.s32.totalorder %s1041_s4, %s1031_s9 }
  0x6e   :  { %p767_p8 = scmp.ne.s32.totalorder %s1041_s4, %s766_s12  ;;  %p772_p10 = scmp.lt.s32.totalorder %s1061_s29, %s766_s12 }
  0x70   :  { %p773_p11 = por %p772_p10, %p771_p9 }
  0x72   :  { %p774_p12 = pnand %p773_p11, %p767_p8 }
  0x74   :  { %777 = shalt.err (!%p774_p12)  }
  0x75   :  { %98 = dma.hbm_to_vmem [thread:$0]  %s85_s18, 16, %s1041_s4, [#allocation3 + $0x2] }
  0x76   :  { %s101_s24 = scalar_lea.hbm %s1181_s1, %s522_s19 }
  0x77   :  { %s778_s26 = scalar_lea.hbm %s101_s24, 16  ;;  %p781_p0 = scmp.lt.u32.totalorder %s101_s24, %s1181_s1 }
  0x78   :  { %p779_p13 = scmp.ne.s32.totalorder %s101_s24, %s778_s26  ;;  %p782_p1 = scmp.lt.u32.totalorder %s1052_s25, %s778_s26 }
  0x79   :  { %p784_p3 = scmp.lt.u32.totalorder %s778_s26, %s101_s24 }
  0x7a   :  { %p783_p2 = por %p782_p1, %p781_p0 }
  0x7c   :  { %p785_p4 = por %p784_p3, %p783_p2 }
  0x7e   :  { %p786_p5 = pnand %p785_p4, %p779_p13 }
  0x80   :  { %789 = shalt.err (!%p786_p5)  }
  0x81   :  { %s790_s2 = scalar_lea.vmem %s112_s17, 16  ;;  %p795_p7 = scmp.lt.s32.totalorder %s112_s17, %s1031_s9 }
  0x82   :  { %p791_p6 = scmp.ne.s32.totalorder %s112_s17, %s790_s2  ;;  %p796_p8 = scmp.lt.s32.totalorder %s1061_s29, %s790_s2 }
  0x84   :  { %p797_p9 = por %p796_p8, %p795_p7 }
  0x86   :  { %p798_p10 = pnand %p797_p9, %p791_p6 }
  0x88   :  { %801 = shalt.err (!%p798_p10)  }
  0x89   :  { %114 = dma.hbm_to_vmem [thread:$0]  %s101_s24, 16, %s112_s17, [#allocation3 + $0x3] }
  0x8a   :  { %s523_s4 = sld [smem:[#allocation5 + $0x4]]  ;;  %s953_s30 = smov [#allocation2 + $0x4]  }
  0x8b   :  { %s127_s7 = sshll.u32 %s953_s30, 4  ;;  %s1105_s8 = sld [smem:[#allocation5 + $0x5]]  ;;  %s128_s7 = int_to_ptr.vmem [resolvable:$true] %s127_s7 }
  0x8c   :  { %s954_s10 = smov [#allocation2 + $0x5]   ;;  %s1107_s14 = sld [smem:[#allocation5 + $0x6]] }
  0x8d   :  { %s143_s11 = sshll.u32 %s954_s10, 4  ;;  %s955_s0 = smov [#allocation2 + $0x6]   ;;  %s1109_s11 = int_to_ptr.vmem [resolvable:$true] %s143_s11 }
  0x8e   :  { %s159_s13 = sshll.u32 %s955_s0, 4  ;;  %s1111_s16 = sld [smem:[#allocation5 + $0x7]]  ;;  %s1113_s13 = int_to_ptr.vmem [resolvable:$true] %s159_s13 }
  0x90   :  { %s524_s18 = sshll.u32 %s523_s4, 4 }
  0x91   :  { %s117_s20 = scalar_lea.hbm %s1181_s1, %s524_s18  ;;  %s526_s21 = sshll.u32 %s1105_s8, 4 }
  0x92   :  { %s802_s22 = scalar_lea.hbm %s117_s20, 16  ;;  %p805_p12 = scmp.lt.u32.totalorder %s117_s20, %s1181_s1 }
  0x93   :  { %p803_p11 = scmp.ne.s32.totalorder %s117_s20, %s802_s22  ;;  %p806_p13 = scmp.lt.u32.totalorder %s1052_s25, %s802_s22 }
  0x94   :  { %p808_p1 = scmp.lt.u32.totalorder %s802_s22, %s117_s20 }
  0x95   :  { %p807_p0 = por %p806_p13, %p805_p12 }
  0x97   :  { %p809_p2 = por %p808_p1, %p807_p0 }
  0x99   :  { %p810_p3 = pnand %p809_p2, %p803_p11 }
  0x9b   :  { %813 = shalt.err (!%p810_p3)  }
  0x9c   :  { %s814_s23 = scalar_lea.vmem %s128_s7, 16  ;;  %p819_p5 = scmp.lt.s32.totalorder %s128_s7, %s1031_s9 }
  0x9d   :  { %p815_p4 = scmp.ne.s32.totalorder %s128_s7, %s814_s23  ;;  %p820_p6 = scmp.lt.s32.totalorder %s1061_s29, %s814_s23 }
  0x9f   :  { %p821_p7 = por %p820_p6, %p819_p5 }
  0xa1   :  { %p822_p8 = pnand %p821_p7, %p815_p4 }
  0xa3   :  { %825 = shalt.err (!%p822_p8)  }
  0xa4   :  { %130 = dma.hbm_to_vmem [thread:$0]  %s117_s20, 16, %s128_s7, [#allocation3 + $0x4] }
  0xa5   :  { %s133_s27 = scalar_lea.hbm %s1181_s1, %s526_s21  ;;  %s528_s28 = sshll.u32 %s1107_s14, 4 }
  0xa6   :  { %s826_s2 = scalar_lea.hbm %s133_s27, 16  ;;  %p829_p10 = scmp.lt.u32.totalorder %s133_s27, %s1181_s1 }
  0xa7   :  { %p827_p9 = scmp.ne.s32.totalorder %s133_s27, %s826_s2  ;;  %p830_p11 = scmp.lt.u32.totalorder %s1052_s25, %s826_s2 }
  0xa8   :  { %p832_p13 = scmp.lt.u32.totalorder %s826_s2, %s133_s27 }
  0xa9   :  { %p831_p12 = por %p830_p11, %p829_p10 }
  0xab   :  { %p833_p0 = por %p832_p13, %p831_p12 }
  0xad   :  { %p834_p1 = pnand %p833_p0, %p827_p9 }
  0xaf   :  { %837 = shalt.err (!%p834_p1)  }
  0xb0   :  { %s838_s7 = scalar_lea.vmem %s1109_s11, 16  ;;  %p843_p3 = scmp.lt.s32.totalorder %s1109_s11, %s1031_s9 }
  0xb1   :  { %p839_p2 = scmp.ne.s32.totalorder %s1109_s11, %s838_s7  ;;  %p844_p4 = scmp.lt.s32.totalorder %s1061_s29, %s838_s7 }
  0xb3   :  { %p845_p5 = por %p844_p4, %p843_p3 }
  0xb5   :  { %p846_p6 = pnand %p845_p5, %p839_p2 }
  0xb7   :  { %849 = shalt.err (!%p846_p6)  }
  0xb8   :  { %146 = dma.hbm_to_vmem [thread:$0]  %s133_s27, 16, %s1109_s11, [#allocation3 + $0x5] }
  0xb9   :  { %s149_s14 = scalar_lea.hbm %s1181_s1, %s528_s28  ;;  %s530_s0 = sshll.u32 %s1111_s16, 4 }
  0xba   :  { %s850_s18 = scalar_lea.hbm %s149_s14, 16  ;;  %p853_p8 = scmp.lt.u32.totalorder %s149_s14, %s1181_s1 }
  0xbb   :  { %p851_p7 = scmp.ne.s32.totalorder %s149_s14, %s850_s18  ;;  %p854_p9 = scmp.lt.u32.totalorder %s1052_s25, %s850_s18 }
  0xbc   :  { %p856_p11 = scmp.lt.u32.totalorder %s850_s18, %s149_s14 }
  0xbd   :  { %p855_p10 = por %p854_p9, %p853_p8 }
  0xbf   :  { %p857_p12 = por %p856_p11, %p855_p10 }
  0xc1   :  { %p858_p13 = pnand %p857_p12, %p851_p7 }
  0xc3   :  { %861 = shalt.err (!%p858_p13)  }
  0xc4   :  { %s862_s11 = scalar_lea.vmem %s1113_s13, 16  ;;  %p867_p1 = scmp.lt.s32.totalorder %s1113_s13, %s1031_s9 }
  0xc5   :  { %p863_p0 = scmp.ne.s32.totalorder %s1113_s13, %s862_s11  ;;  %p868_p2 = scmp.lt.s32.totalorder %s1061_s29, %s862_s11 }
  0xc7   :  { %p869_p3 = por %p868_p2, %p867_p1 }
  0xc9   :  { %p870_p4 = pnand %p869_p3, %p863_p0 }
  0xcb   :  { %873 = shalt.err (!%p870_p4)  }
  0xcc   :  { %162 = dma.hbm_to_vmem [thread:$0]  %s149_s14, 16, %s1113_s13, [#allocation3 + $0x6] }
  0xcd   :  { %s165_s21 = scalar_lea.hbm %s1181_s1, %s530_s0  ;;  %s956_s22 = smov [#allocation2 + $0x7]  }
  0xce   :  { %s175_s12 = sshll.u32 %s956_s22, 4  ;;  %s874_s15 = scalar_lea.hbm %s165_s21, 16  ;;  %s176_s12 = int_to_ptr.vmem [resolvable:$true] %s175_s12 }
  0xcf   :  { %p875_p5 = scmp.ne.s32.totalorder %s165_s21, %s874_s15  ;;  %p877_p6 = scmp.lt.u32.totalorder %s165_s21, %s1181_s1 }
  0xd0   :  { %p878_p7 = scmp.lt.u32.totalorder %s1052_s25, %s874_s15  ;;  %p880_p9 = scmp.lt.u32.totalorder %s874_s15, %s165_s21 }
  0xd2   :  { %p879_p8 = por %p878_p7, %p877_p6 }
  0xd4   :  { %p881_p10 = por %p880_p9, %p879_p8 }
  0xd6   :  { %p882_p11 = pnand %p881_p10, %p875_p5 }
  0xd8   :  { %885 = shalt.err (!%p882_p11)  }
  0xd9   :  { %s886_s13 = scalar_lea.vmem %s176_s12, 16  ;;  %p891_p13 = scmp.lt.s32.totalorder %s176_s12, %s1031_s9 }
  0xda   :  { %p887_p12 = scmp.ne.s32.totalorder %s176_s12, %s886_s13  ;;  %p892_p0 = scmp.lt.s32.totalorder %s1061_s29, %s886_s13 }
  0xdc   :  { %p893_p1 = por %p892_p0, %p891_p13 }
  0xde   :  { %p894_p2 = pnand %p893_p1, %p887_p12 }
  0xe0   :  { %897 = shalt.err (!%p894_p2)  }
  0xe1   :  { %178 = dma.hbm_to_vmem [thread:$0]  %s165_s21, 16, %s176_s12, [#allocation3 + $0x7] }
  0xe2   :  { %926 = dma.done.wait [#allocation3], 16 }
  0xe3   :  { %927 = vsyncadd [#allocation3], 4294967280 }
  0xe4   :  { %928 = dma.done.wait [#allocation3 + $0x1], 16 }
  0xe5   :  { %929 = vsyncadd [#allocation3 + $0x1], 4294967280 }
  0xe6   :  { %930 = dma.done.wait [#allocation3 + $0x2], 16 }
  0xe7   :  { %931 = vsyncadd [#allocation3 + $0x2], 4294967280 }
  0xe8   :  { %932 = dma.done.wait [#allocation3 + $0x3], 16 }
  0xe9   :  { %933 = vsyncadd [#allocation3 + $0x3], 4294967280 }
  0xea   :  { %934 = dma.done.wait [#allocation3 + $0x4], 16 }
  0xeb   :  { %935 = vsyncadd [#allocation3 + $0x4], 4294967280 }
  0xec   :  { %936 = dma.done.wait [#allocation3 + $0x5], 16 }
  0xed   :  { %937 = vsyncadd [#allocation3 + $0x5], 4294967280 }
  0xee   :  { %938 = dma.done.wait [#allocation3 + $0x6], 16 }
  0xef   :  { %939 = vsyncadd [#allocation3 + $0x6], 4294967280 }
  0xf0   :  { %940 = dma.done.wait [#allocation3 + $0x7], 16 }
  0xf1   :  { %941 = vsyncadd [#allocation3 + $0x7], 4294967280  ;;  %v957_v0 = vmov 0.0   ;;  %vm958_vm0 = vmmov 0   ;;  %v632_v1 = vld [vmem:[#allocation6] sm:$0xff]   ;;  %v633_v2 = vld [vmem:[#allocation6 + $0x8] sm:$0xff]  }
  0xf2   :  { %576 = vmatprep.subr.bf16.mxu0 %v957_v0  ;;  %592 = vmatprep.mubr.msk.bf16.mxu0 %vm958_vm0, %v957_v0  ;;  %v634_v3 = vld [vmem:[#allocation6 + $0x10] sm:$0xff]   ;;  %v635_v4 = vld [vmem:[#allocation6 + $0x18] sm:$0xff]   ;;  %v636_v5 = vld [vmem:[#allocation6 + $0x20] sm:$0xff]   ;;  %s959_s26 = smov [#allocation11]  }
  0xf3   :  { %596 = vmatprep.subr.bf16.mxu1 %v957_v0  ;;  %612 = vmatprep.mubr.msk.bf16.mxu1 %vm958_vm0, %v957_v0  ;;  %v637_v6 = vld [vmem:[#allocation6 + $0x28] sm:$0xff]   ;;  %v638_v7 = vld [vmem:[#allocation6 + $0x30] sm:$0xff]   ;;  %v639_v8 = vld [vmem:[#allocation6 + $0x38] sm:$0xff]  }
  0xf4   :  { %577 = vmatpush3.bf16.msra.mxu0 %v632_v1  ;;  %v196_v9 = vld [vmem:[#allocation2] sm:$0xff]  ;;  %v640_v11 = vld [vmem:[#allocation9] sm:$0xff]   ;;  %v641_v12 = vld [vmem:[#allocation9 + $0x8] sm:$0xff]  }
  0xf5   :  { %578 = vmatprep.subr.bf16.mxu0 %v957_v0  ;;  %v197_v10 = vpack.c.bf16 %v196_v9, %v196_v9  ;;  %597 = vmatpush3.bf16.msra.mxu1 %v640_v11  ;;  %v642_v13 = vld [vmem:[#allocation9 + $0x10] sm:$0xff]   ;;  %v643_v14 = vld [vmem:[#allocation9 + $0x18] sm:$0xff]   ;;  %v644_v15 = vld [vmem:[#allocation9 + $0x20] sm:$0xff]  }
  0xf6   :  { %598 = vmatprep.subr.bf16.mxu1 %v957_v0  ;;  %v645_v16 = vld [vmem:[#allocation9 + $0x28] sm:$0xff]   ;;  %v646_v17 = vld [vmem:[#allocation9 + $0x30] sm:$0xff]   ;;  %v647_v18 = vld [vmem:[#allocation9 + $0x38] sm:$0xff]  }
  0xf7   :  { %v531_v19 = vld [vmem:[%s1183_s3] ss:$0 sm:$0xff]  ;;  %s435_s3 = sshll.u32 %s959_s26, 4  ;;  %s436_s3 = int_to_ptr.vmem [resolvable:$true] %s435_s3 }
  0xf8   :  { %579 = vmatpush3.bf16.msra.mxu0 %v633_v2  ;;  %v541_v31 = vld [vmem:[%s1185_s5] ss:$0 sm:$0xff]  ;;  %s898_s27 = scalar_lea.vmem %s436_s3, 128  ;;  %p903_p4 = scmp.lt.s32.totalorder %s436_s3, %s436_s3 }
  0xf9   :  { %580 = vmatprep.subr.bf16.mxu0 %v957_v0  ;;  %599 = vmatpush3.bf16.msra.mxu1 %v641_v12  ;;  %p899_p3 = scmp.ne.s32.totalorder %s436_s3, %s898_s27  ;;  %p904_p5 = scmp.lt.s32.totalorder %s898_s27, %s898_s27 }
  0xfa   :  { %600 = vmatprep.subr.bf16.mxu1 %v957_v0 }
  0xfb   :  { %p905_p6 = por %p904_p5, %p903_p4 }
  0xfc   :  { %581 = vmatpush3.bf16.msra.mxu0 %v634_v3 }
  0xfd   :  { %582 = vmatprep.subr.bf16.mxu0 %v957_v0  ;;  %601 = vmatpush3.bf16.msra.mxu1 %v642_v13  ;;  %p906_p7 = pnand %p905_p6, %p899_p3 }
  0xfe   :  { %602 = vmatprep.subr.bf16.mxu1 %v957_v0 }
 0x100   :  { %583 = vmatpush3.bf16.msra.mxu0 %v635_v4 }
 0x101   :  { %584 = vmatprep.subr.bf16.mxu0 %v957_v0  ;;  %603 = vmatpush3.bf16.msra.mxu1 %v643_v14 }
 0x102   :  { %604 = vmatprep.subr.bf16.mxu1 %v957_v0 }
 0x104   :  { %585 = vmatpush3.bf16.msra.mxu0 %v636_v5 }
 0x105   :  { %586 = vmatprep.subr.bf16.mxu0 %v957_v0  ;;  %605 = vmatpush3.bf16.msra.mxu1 %v644_v15 }
 0x106   :  { %606 = vmatprep.subr.bf16.mxu1 %v957_v0 }
 0x108   :  { %587 = vmatpush3.bf16.msra.mxu0 %v637_v6 }
 0x109   :  { %588 = vmatprep.subr.bf16.mxu0 %v957_v0  ;;  %607 = vmatpush3.bf16.msra.mxu1 %v645_v16 }
 0x10a   :  { %608 = vmatprep.subr.bf16.mxu1 %v957_v0 }
 0x10c   :  { %589 = vmatpush3.bf16.msra.mxu0 %v638_v7 }
 0x10d   :  { %590 = vmatprep.subr.bf16.mxu0 %v957_v0  ;;  %609 = vmatpush3.bf16.msra.mxu1 %v646_v17 }
 0x10e   :  { %610 = vmatprep.subr.bf16.mxu1 %v957_v0 }
 0x110   :  { %591 = vmatpush3.bf16.msra.mxu0 %v639_v8 }
 0x111   :  { %611 = vmatpush3.bf16.msra.mxu1 %v647_v18 }
 0x113   :  { %593 = vmatmul.mubr.bf16.vlgmr.msra.gmra.mrb[0].mxu0 %v197_v10 }
 0x1e6   :  { %v303_v20 = vpop.f32.mrb[0].mxu0 }
 0x1e7   :  { %v304_v21 = vadd.f32 %v531_v19, %v303_v20  ;;  %v594_v22 = vpop.f32.mrb[1].mxu0 }
 0x1e8   :  { %v306_v23 = vpop.f32.mrb[2].mxu0 }
 0x1e9   :  { %v540_v24 = vmul.f32 -1.442695, %v304_v21  ;;  %v595_v25 = vpop.f32.mrb[3].mxu0 }
 0x1eb   :  { %648 = vpow2.f32 %v540_v24 }
 0x1f5   :  { %v649_v26 = vpop.eup %648 }
 0x1f6   :  { %v312_v27 = vadd.f32 1.0, %v649_v26 }
 0x1f8   :  { %650 = vrcp.f32 %v312_v27 }
 0x202   :  { %v651_v28 = vpop.eup %650 }
 0x203   :  { %v315_v29 = vmul.f32 %v651_v28, %v304_v21 }
 0x205   :  { %v316_v30 = vpack.c.bf16 %v315_v29, %v315_v29 }
 0x207   :  { %613 = vmatmul.mubr.bf16.vlgmr.msra.gmra.mrb[0].mxu1 %v316_v30 }
 0x2da   :  { %v422_v32 = vpop.f32.mrb[0].mxu1 }
 0x2db   :  { %v423_v33 = vadd.f32 %v541_v31, %v422_v32  ;;  %v614_v34 = vpop.f32.mrb[1].mxu1 }
 0x2dc   :  { %v425_v35 = vpop.f32.mrb[2].mxu1 }
 0x2dd   :  { %428 = vst [vmem:[#allocation11] sm:$0xff] %v423_v33  ;;  %v615_v36 = vpop.f32.mrb[3].mxu1 }
 0x2de   :  { %909 = shalt.err (!%p906_p7)
}
 0x2df   :  { %s910_s5 = scalar_lea.hbm %s1186_s6, 128 }
 0x2e0   :  { %p911_p8 = scmp.ne.s32.totalorder %s1186_s6, %s910_s5  ;;  %p914_p9 = scmp.lt.u32.totalorder %s910_s5, %s1186_s6 }
 0x2e2   :  { %p916_p10 = pnand %p914_p9, %p911_p8 }
 0x2e4   :  { %919 = shalt.err (!%p916_p10)
}
 0x2e5   :  { %438 = dma.vmem_to_hbm [thread:$0]  %s436_s3, 128, %s1186_s6, [#allocation8]  }
 0x2e6   :  { %942 = dma.done.wait [#allocation8], 128  }
 0x2e7   :  { %943 = vsyncadd [#allocation8], 4294967168 }
 0x2e8   :  { %442 = vsyncpa [#allocation7], 1 }
 0x2e9   :  { %443 = vsyncpa [#allocation10], 1 }
 0x2ea   :  { %444 = vsyncpa [#allocation8], 1 }
 0x2eb   :  { %445 = vsyncmov [#allocation3] }
 0x2ee   :  { %s446_s0 = vpop.sfrf %445 }
 0x2ef   :  { %p550_p11 = scmp.ne.s32.totalorder %s446_s0, 0 }
 0x2f1   :  { %450 = shalt.err (%p550_p11)  }
 0x2f2   :  { %452 = vsyncmov [#allocation3 + $0x1] }
 0x2f5   :  { %s453_s18 = vpop.sfrf %452 }
 0x2f6   :  { %p551_p12 = scmp.ne.s32.totalorder %s453_s18, 0 }
 0x2f8   :  { %457 = shalt.err (%p551_p12)  }
 0x2f9   :  { %459 = vsyncmov [#allocation3 + $0x2] }
 0x2fc   :  { %s460_s17 = vpop.sfrf %459 }
 0x2fd   :  { %p552_p13 = scmp.ne.s32.totalorder %s460_s17, 0 }
 0x2ff   :  { %464 = shalt.err (%p552_p13)  }
 0x300   :  { %466 = vsyncmov [#allocation3 + $0x3] }
 0x303   :  { %s467_s19 = vpop.sfrf %466 }
 0x304   :  { %p553_p0 = scmp.ne.s32.totalorder %s467_s19, 0 }
 0x306   :  { %471 = shalt.err (%p553_p0)  }
 0x307   :  { %473 = vsyncmov [#allocation3 + $0x4] }
 0x30a   :  { %s474_s6 = vpop.sfrf %473 }
 0x30b   :  { %p554_p1 = scmp.ne.s32.totalorder %s474_s6, 0 }
 0x30d   :  { %478 = shalt.err (%p554_p1)  }
 0x30e   :  { %480 = vsyncmov [#allocation3 + $0x5] }
 0x311   :  { %s481_s11 = vpop.sfrf %480 }
 0x312   :  { %p555_p2 = scmp.ne.s32.totalorder %s481_s11, 0 }
 0x314   :  { %485 = shalt.err (%p555_p2)  }
 0x315   :  { %487 = vsyncmov [#allocation3 + $0x6] }
 0x318   :  { %s488_s16 = vpop.sfrf %487 }
 0x319   :  { %p556_p3 = scmp.ne.s32.totalorder %s488_s16, 0 }
 0x31b   :  { %492 = shalt.err (%p556_p3)  }
 0x31c   :  { %494 = vsyncmov [#allocation3 + $0x7] }
 0x31f   :  { %s495_s20 = vpop.sfrf %494 }
 0x320   :  { %p557_p4 = scmp.ne.s32.totalorder %s495_s20, 0 }
 0x322   :  { %499 = shalt.err (%p557_p4)  }

</bundles_post_ra>
